<compile_context>
chip_gen: v7x
topology: tpu7x:2x2x1
jax: 0.10.0
libtpu: 0.0.40
codegen_flags: <defaults>
</compile_context>

<pallas_src>
import functools

import jax
import jax.numpy as jnp
from jax.experimental import pallas as pl
from jax.experimental.pallas import tpu as pltpu

NEG_SLOPE = 0.01  # PyTorch LeakyReLU default negative_slope
LANE = 128        # TPU vreg lane width
SUBLANE = 8       # TPU vreg sublane count


def _leaky_relu(x):
    return jnp.where(x > 0, x, NEG_SLOPE * x)


def _round_up(x, m):
    return ((x + m - 1) // m) * m


def _mlp_kernel(x_ref, w1_ref, b1_ref, w2_ref, b2_ref, w3_ref, b3_ref, o_ref):
    # Fused 3-layer MLP on one batch tile. Matmuls run in bf16 on the MXU with f32
    # accumulation; bias add + LeakyReLU in f32 on the VPU.
    x = x_ref[...]                                                           # (tb, Fp) bf16
    h1 = jnp.dot(x, w1_ref[...], preferred_element_type=jnp.float32) + b1_ref[...]
    h1 = _leaky_relu(h1).astype(jnp.bfloat16)                                # (tb, H) bf16
    h2 = jnp.dot(h1, w2_ref[...], preferred_element_type=jnp.float32) + b2_ref[...]
    h2 = _leaky_relu(h2).astype(jnp.bfloat16)                                # (tb, H) bf16
    logits = jnp.dot(h2, w3_ref[...], preferred_element_type=jnp.float32) + b3_ref[...]
    o_ref[...] = logits.astype(o_ref.dtype)                                  # (tb, Cp) f32


@functools.partial(jax.jit, static_argnames=("block_b",))
def hand_ges_rec_net_forward(x, params, block_b=256):
    """x: any shape (B, ...) -- flattened to (B, feature_cnt) like nn.Flatten."""
    w1, b1, w2, b2, w3, b3 = params
    B = x.shape[0]
    x2d = x.reshape(B, -1).astype(jnp.float32)       # nn.Flatten (glue in plain JAX)
    F = x2d.shape[1]
    H = w1.shape[1]
    C = w3.shape[1]

    # --- lane alignment: pad feature dim (K of first matmul) and classifier dim ---
    Fp = _round_up(F, LANE)                          # 63 -> 128: aligned loads / MXU K
    Cp = _round_up(C, LANE)                          # 10 -> 128: lane-dense output stores
    if Fp != F:
        x2d = jnp.pad(x2d, ((0, 0), (0, Fp - F)))
        w1 = jnp.pad(w1, ((0, Fp - F), (0, 0)))      # zero rows -> results unchanged
    if Cp != C:
        w3 = jnp.pad(w3, ((0, 0), (0, Cp - C)))
        b3 = jnp.pad(b3, ((0, 0), (0, Cp - C)))

    # --- batch tile selection: 8-aligned tiles, >=2 grid steps when the batch allows it
    #     (batch axis is "parallel" -> v7x megacore can shard it across both TCs). ---
    Bp = _round_up(B, SUBLANE)
    tb = min(_round_up(block_b, SUBLANE), Bp)
    if Bp > 2 * SUBLANE:
        tb = min(tb, _round_up(pl.cdiv(Bp, 2), SUBLANE))
    Bp = _round_up(Bp, tb)                           # every grid step is a full tile
    if Bp != B:
        x2d = jnp.pad(x2d, ((0, Bp - B), (0, 0)))    # zero rows, sliced off at the end
    grid = (Bp // tb,)

    # --- bf16 matmul operands, f32 biases/accumulation ---
    x2d = x2d.astype(jnp.bfloat16)
    w1 = w1.astype(jnp.bfloat16)
    w2 = w2.astype(jnp.bfloat16)
    w3 = w3.astype(jnp.bfloat16)
    b1 = b1.astype(jnp.float32)
    b2 = b2.astype(jnp.float32)
    b3 = b3.astype(jnp.float32)

    out = pl.pallas_call(
        _mlp_kernel,
        out_shape=jax.ShapeDtypeStruct((Bp, Cp), jnp.float32),
        grid_spec=pltpu.PrefetchScalarGridSpec(
            num_scalar_prefetch=0,
            grid=grid,
            in_specs=[
                pl.BlockSpec((tb, Fp), lambda i: (i, 0)),   # x tile streamed over batch
                # Weights/biases: constant index_map -> loaded once, resident in VMEM.
                pl.BlockSpec((Fp, H), lambda i: (0, 0)),    # W1
                pl.BlockSpec((1, H), lambda i: (0, 0)),     # b1
                pl.BlockSpec((H, H), lambda i: (0, 0)),     # W2
                pl.BlockSpec((1, H), lambda i: (0, 0)),     # b2
                pl.BlockSpec((H, Cp), lambda i: (0, 0)),    # W3 (padded cols)
                pl.BlockSpec((1, Cp), lambda i: (0, 0)),    # b3 (padded cols)
            ],
            out_specs=pl.BlockSpec((tb, Cp), lambda i: (i, 0)),
        ),
        compiler_params=pltpu.CompilerParams(
            dimension_semantics=("parallel",),
        ),
    )(x2d, w1, b1, w2, b2, w3, b3)

    return out[:B, :C]


def init_params(key, feature_cnt, class_cnt, hidden=256):
    """Deterministic synthetic parameters (Kaiming-uniform-like), stored as (in, out)."""
    ks = jax.random.split(key, 6)

    def lin(kw, kb, fan_in, fan_out):
        bound = 1.0 / jnp.sqrt(float(fan_in))
        w = jax.random.uniform(kw, (fan_in, fan_out), jnp.float32, -bound, bound)
        b = jax.random.uniform(kb, (1, fan_out), jnp.float32, -bound, bound)
        return w, b

    w1, b1 = lin(ks[0], ks[1], feature_cnt, hidden)
    w2, b2 = lin(ks[2], ks[3], hidden, hidden)
    w3, b3 = lin(ks[4], ks[5], hidden, class_cnt)
    return (w1, b1, w2, b2, w3, b3)


def _reference_forward(x, params):
    """Full-f32 reference matching the PyTorch module semantics."""
    w1, b1, w2, b2, w3, b3 = params
    x = x.reshape(x.shape[0], -1).astype(jnp.float32)
    h = _leaky_relu(x @ w1 + b1)
    h = _leaky_relu(h @ w2 + b2)
    return h @ w3 + b3


if __name__ == "__main__":
    # MediaPipe hand landmarks: 21 landmarks x 3 coords = 63 features.
    batch = 16
    feature_cnt = 63
    class_cnt = 10

    key = jax.random.PRNGKey(0)
    k_x, k_p = jax.random.split(key)

    # Raw landmark input shaped (B, 21, 3); nn.Flatten -> (B, 63).
    x = jax.random.normal(k_x, (batch, 21, 3), jnp.float32)
    params = init_params(k_p, feature_cnt, class_cnt)

    logits = hand_ges_rec_net_forward(x, params)
    logits = jax.block_until_ready(logits)

    ref = _reference_forward(x, params)
    assert logits.shape == (batch, class_cnt)
    # bf16 matmul operands (f32 accumulation) -> looser tolerance vs the f32 reference.
    assert jnp.allclose(logits, ref, atol=5e-2, rtol=5e-2), "mismatch vs reference"

    print("KERNEL_OK")
</pallas_src>

<mosaic_0001>
module attributes {stable_mosaic.version = 11 : i64} {
  func.func @_mlp_kernel(%arg0: i32, %arg1: memref<16x128xbf16, #tpu.memory_space<vmem>>, %arg2: memref<128x256xbf16, #tpu.memory_space<vmem>>, %arg3: memref<1x256xf32, #tpu.memory_space<vmem>>, %arg4: memref<256x256xbf16, #tpu.memory_space<vmem>>, %arg5: memref<1x256xf32, #tpu.memory_space<vmem>>, %arg6: memref<256x128xbf16, #tpu.memory_space<vmem>>, %arg7: memref<1x128xf32, #tpu.memory_space<vmem>>, %arg8: memref<16x128xf32, #tpu.memory_space<vmem>>) attributes {dimension_semantics = [#tpu.dimension_semantics<parallel>], iteration_bounds = array<i64: 1>, scalar_prefetch = 0 : i64, scratch_operands = 0 : i64, tpu.core_type = #tpu.core_type<tc>, window_params = [{transform_indices = @transform_0, window_bounds = array<i64: 16, 128>}, {pipeline_mode = #tpu.pipeline_mode<synchronous>, transform_indices = @transform_1, window_bounds = array<i64: 128, 256>}, {pipeline_mode = #tpu.pipeline_mode<synchronous>, transform_indices = @transform_2, window_bounds = array<i64: 1, 256>}, {pipeline_mode = #tpu.pipeline_mode<synchronous>, transform_indices = @transform_3, window_bounds = array<i64: 256, 256>}, {pipeline_mode = #tpu.pipeline_mode<synchronous>, transform_indices = @transform_4, window_bounds = array<i64: 1, 256>}, {pipeline_mode = #tpu.pipeline_mode<synchronous>, transform_indices = @transform_5, window_bounds = array<i64: 256, 128>}, {pipeline_mode = #tpu.pipeline_mode<synchronous>, transform_indices = @transform_6, window_bounds = array<i64: 1, 128>}, {transform_indices = @transform_7, window_bounds = array<i64: 16, 128>}]} {
    %c0 = arith.constant 0 : index
    %c0_0 = arith.constant 0 : index
    %0 = vector.load %arg1[%c0, %c0_0] : memref<16x128xbf16, #tpu.memory_space<vmem>>, vector<16x128xbf16>
    %c0_1 = arith.constant 0 : index
    %c0_2 = arith.constant 0 : index
    %1 = vector.load %arg2[%c0_1, %c0_2] : memref<128x256xbf16, #tpu.memory_space<vmem>>, vector<128x256xbf16>
    %cst = arith.constant dense<0.000000e+00> : vector<16x256xf32>
    %2 = tpu.matmul %0, %1, %cst {dimension_numbers = #tpu.dot_dimension_numbers<[1], [0], [0], [1], [0, 0, 1, 1], [], []>} : vector<16x128xbf16>, vector<128x256xbf16>, vector<16x256xf32> -> vector<16x256xf32>
    %c0_3 = arith.constant 0 : index
    %c0_4 = arith.constant 0 : index
    %3 = vector.load %arg3[%c0_3, %c0_4] : memref<1x256xf32, #tpu.memory_space<vmem>>, vector<1x256xf32>
    %4 = vector.broadcast %3 : vector<1x256xf32> to vector<16x256xf32>
    %5 = arith.addf %2, %4 : vector<16x256xf32>
    %cst_5 = arith.constant 0.000000e+00 : f32
    %6 = vector.broadcast %cst_5 : f32 to vector<16x256xf32>
    %7 = arith.cmpf ogt, %5, %6 : vector<16x256xf32>
    %cst_6 = arith.constant 0.00999999977 : f32
    %8 = vector.broadcast %cst_6 : f32 to vector<16x256xf32>
    %9 = arith.mulf %8, %5 : vector<16x256xf32>
    %10 = arith.select %7, %5, %9 : vector<16x256xi1>, vector<16x256xf32>
    %11 = arith.truncf %10 : vector<16x256xf32> to vector<16x256xbf16>
    %c0_7 = arith.constant 0 : index
    %c0_8 = arith.constant 0 : index
    %12 = vector.load %arg4[%c0_7, %c0_8] : memref<256x256xbf16, #tpu.memory_space<vmem>>, vector<256x256xbf16>
    %cst_9 = arith.constant dense<0.000000e+00> : vector<16x256xf32>
    %13 = tpu.matmul %11, %12, %cst_9 {dimension_numbers = #tpu.dot_dimension_numbers<[1], [0], [0], [1], [0, 0, 1, 1], [], []>} : vector<16x256xbf16>, vector<256x256xbf16>, vector<16x256xf32> -> vector<16x256xf32>
    %c0_10 = arith.constant 0 : index
    %c0_11 = arith.constant 0 : index
    %14 = vector.load %arg5[%c0_10, %c0_11] : memref<1x256xf32, #tpu.memory_space<vmem>>, vector<1x256xf32>
    %15 = vector.broadcast %14 : vector<1x256xf32> to vector<16x256xf32>
    %16 = arith.addf %13, %15 : vector<16x256xf32>
    %cst_12 = arith.constant 0.000000e+00 : f32
    %17 = vector.broadcast %cst_12 : f32 to vector<16x256xf32>
    %18 = arith.cmpf ogt, %16, %17 : vector<16x256xf32>
    %cst_13 = arith.constant 0.00999999977 : f32
    %19 = vector.broadcast %cst_13 : f32 to vector<16x256xf32>
    %20 = arith.mulf %19, %16 : vector<16x256xf32>
    %21 = arith.select %18, %16, %20 : vector<16x256xi1>, vector<16x256xf32>
    %22 = arith.truncf %21 : vector<16x256xf32> to vector<16x256xbf16>
    %c0_14 = arith.constant 0 : index
    %c0_15 = arith.constant 0 : index
    %23 = vector.load %arg6[%c0_14, %c0_15] : memref<256x128xbf16, #tpu.memory_space<vmem>>, vector<256x128xbf16>
    %cst_16 = arith.constant dense<0.000000e+00> : vector<16x128xf32>
    %24 = tpu.matmul %22, %23, %cst_16 {dimension_numbers = #tpu.dot_dimension_numbers<[1], [0], [0], [1], [0, 0, 1, 1], [], []>} : vector<16x256xbf16>, vector<256x128xbf16>, vector<16x128xf32> -> vector<16x128xf32>
    %c0_17 = arith.constant 0 : index
    %c0_18 = arith.constant 0 : index
    %25 = vector.load %arg7[%c0_17, %c0_18] : memref<1x128xf32, #tpu.memory_space<vmem>>, vector<1x128xf32>
    %26 = vector.broadcast %25 : vector<1x128xf32> to vector<16x128xf32>
    %27 = arith.addf %24, %26 : vector<16x128xf32>
    %c0_19 = arith.constant 0 : index
    %c0_20 = arith.constant 0 : index
    %28 = vector.load %arg8[%c0_19, %c0_20] : memref<16x128xf32, #tpu.memory_space<vmem>>, vector<16x128xf32>
    tpu.vector_store %arg8[%c0_19, %c0_20], %27 {strides = array<i32>} : memref<16x128xf32, #tpu.memory_space<vmem>>, vector<16x128xf32>,
    return
  }
  func.func @transform_0(%arg0: i32) -> (i32, i32) {
    %c0_i32 = arith.constant 0 : i32
    %c0_i32_0 = arith.constant 0 : i32
    return %arg0, %c0_i32 : i32, i32
  }
  func.func @transform_1(%arg0: i32) -> (i32, i32) {
    %c0_i32 = arith.constant 0 : i32
    %c0_i32_0 = arith.constant 0 : i32
    %c0_i32_1 = arith.constant 0 : i32
    return %c0_i32, %c0_i32_0 : i32, i32
  }
  func.func @transform_2(%arg0: i32) -> (i32, i32) {
    %c0_i32 = arith.constant 0 : i32
    %c0_i32_0 = arith.constant 0 : i32
    %c0_i32_1 = arith.constant 0 : i32
    return %c0_i32, %c0_i32_0 : i32, i32
  }
  func.func @transform_3(%arg0: i32) -> (i32, i32) {
    %c0_i32 = arith.constant 0 : i32
    %c0_i32_0 = arith.constant 0 : i32
    %c0_i32_1 = arith.constant 0 : i32
    return %c0_i32, %c0_i32_0 : i32, i32
  }
  func.func @transform_4(%arg0: i32) -> (i32, i32) {
    %c0_i32 = arith.constant 0 : i32
    %c0_i32_0 = arith.constant 0 : i32
    %c0_i32_1 = arith.constant 0 : i32
    return %c0_i32, %c0_i32_0 : i32, i32
  }
  func.func @transform_5(%arg0: i32) -> (i32, i32) {
    %c0_i32 = arith.constant 0 : i32
    %c0_i32_0 = arith.constant 0 : i32
    %c0_i32_1 = arith.constant 0 : i32
    return %c0_i32, %c0_i32_0 : i32, i32
  }
  func.func @transform_6(%arg0: i32) -> (i32, i32) {
    %c0_i32 = arith.constant 0 : i32
    %c0_i32_0 = arith.constant 0 : i32
    %c0_i32_1 = arith.constant 0 : i32
    return %c0_i32, %c0_i32_0 : i32, i32
  }
  func.func @transform_7(%arg0: i32) -> (i32, i32) {
    %c0_i32 = arith.constant 0 : i32
    %c0_i32_0 = arith.constant 0 : i32
    return %arg0, %c0_i32 : i32, i32
  }
}

</mosaic_0001>

<bundles_post_ra>
// kernel: hand_ges_rec_net_forward.1
= control target key start
LH: loop header
LB: loop body
LE: loop exit
PB: predicated region body
PF: predicated region fallthrough
CT: control target
= control target key end

     0   :  { %v861_v2 = vmov 0   ;;  %s1121_s0 = inlined_call_operand.vmem [shape: bf16[16,128], index: 0, kind: input, shape index: {}]   ;;  %s1122_s1 = inlined_call_operand.vmem [shape: bf16[128,256], index: 1, kind: input, shape index: {}]   ;;  %s1123_s2 = inlined_call_operand.vmem [shape: f32[1,256], index: 2, kind: input, shape index: {}]   ;;  %s1124_s3 = inlined_call_operand.vmem [shape: bf16[256,256], index: 3, kind: input, shape index: {}]   ;;  %s1125_s4 = inlined_call_operand.vmem [shape: f32[1,256], index: 4, kind: input, shape index: {}]   ;;  %s1126_s5 = inlined_call_operand.vmem [shape: bf16[256,128], index: 5, kind: input, shape index: {}]   ;;  %s1127_s6 = inlined_call_operand.vmem [shape: f32[1,128], index: 6, kind: input, shape index: {}]   ;;  %s1128_s7 = inlined_call_operand.hbm [shape: f32[16,128], index: 7, kind: output, shape index: {}]  }
   0x1   :  { %v748_v0 = vld [vmem:[%s1122_s1 + $0x4] ss:$8 sps:$4 sm:$0xff]   ;;  %v750_v1 = vld [vmem:[%s1122_s1] ss:$8 sps:$4 sm:$0xff]   ;;  %176 = vmatprep.mubr.bf16.mxu0 %v861_v2  ;;  %v751_v3 = vld [vmem:[%s1122_s1 + $0x14] ss:$8 sps:$4 sm:$0xff]  }
   0x2   :  { %144 = vmatprep.subr.bf16.mxu0 %v748_v0  ;;  %v753_v4 = vld [vmem:[%s1122_s1 + $0x10] ss:$8 sps:$4 sm:$0xff]   ;;  %v754_v5 = vld [vmem:[%s1122_s1 + $0x24] ss:$8 sps:$4 sm:$0xff]   ;;  %v756_v6 = vld [vmem:[%s1122_s1 + $0x20] ss:$8 sps:$4 sm:$0xff]  }
   0x3   :  { %145 = vmatpush1.bf16.msra.mxu0 %v750_v1  ;;  %v757_v7 = vld [vmem:[%s1122_s1 + $0x34] ss:$8 sps:$4 sm:$0xff]   ;;  %v759_v8 = vld [vmem:[%s1122_s1 + $0x30] ss:$8 sps:$4 sm:$0xff]   ;;  %v760_v9 = vld [vmem:[%s1122_s1 + $0x44] ss:$8 sps:$4 sm:$0xff]  }
   0x4   :  { %146 = vmatprep.subr.bf16.mxu0 %v751_v3  ;;  %v773_v10 = vld [vmem:[%s1124_s3 + $0x4] ss:$8 sps:$4 sm:$0xff]   ;;  %v775_v11 = vld [vmem:[%s1124_s3] ss:$8 sps:$4 sm:$0xff]   ;;  %v776_v12 = vld [vmem:[%s1124_s3 + $0x14] ss:$8 sps:$4 sm:$0xff]  }
   0x5   :  { %405 = vmatprep.subr.bf16.mxu1 %v773_v10  ;;  %v762_v13 = vld [vmem:[%s1122_s1 + $0x40] ss:$8 sps:$4 sm:$0xff]   ;;  %v778_v14 = vld [vmem:[%s1124_s3 + $0x10] ss:$8 sps:$4 sm:$0xff]   ;;  %v763_v15 = vld [vmem:[%s1122_s1 + $0x54] ss:$8 sps:$4 sm:$0xff]  }
   0x6   :  { %406 = vmatpush1.bf16.msra.mxu1 %v775_v11  ;;  %v779_v16 = vld [vmem:[%s1124_s3 + $0x24] ss:$8 sps:$4 sm:$0xff]   ;;  %v765_v17 = vld [vmem:[%s1122_s1 + $0x50] ss:$8 sps:$4 sm:$0xff]   ;;  %v781_v18 = vld [vmem:[%s1124_s3 + $0x20] ss:$8 sps:$4 sm:$0xff]  }
   0x7   :  { %147 = vmatpush1.bf16.msra.mxu0 %v753_v4  ;;  %407 = vmatprep.subr.bf16.mxu1 %v776_v12  ;;  %v766_v19 = vld [vmem:[%s1122_s1 + $0x64] ss:$8 sps:$4 sm:$0xff]   ;;  %v782_v20 = vld [vmem:[%s1124_s3 + $0x34] ss:$8 sps:$4 sm:$0xff]   ;;  %v768_v21 = vld [vmem:[%s1122_s1 + $0x60] ss:$8 sps:$4 sm:$0xff]  }
   0x8   :  { %148 = vmatprep.subr.bf16.mxu0 %v754_v5  ;;  %v784_v22 = vld [vmem:[%s1124_s3 + $0x30] ss:$8 sps:$4 sm:$0xff]   ;;  %v769_v23 = vld [vmem:[%s1122_s1 + $0x74] ss:$8 sps:$4 sm:$0xff]   ;;  %v785_v24 = vld [vmem:[%s1124_s3 + $0x44] ss:$8 sps:$4 sm:$0xff]  }
   0x9   :  { %v771_v25 = vld [vmem:[%s1122_s1 + $0x70] ss:$8 sps:$4 sm:$0xff]   ;;  %v787_v26 = vld [vmem:[%s1124_s3 + $0x40] ss:$8 sps:$4 sm:$0xff]   ;;  %v788_v28 = vld [vmem:[%s1124_s3 + $0x54] ss:$8 sps:$4 sm:$0xff]  }
   0xa   :  { %408 = vmatpush1.bf16.msra.mxu1 %v778_v14  ;;  %v772_v27 = vld [vmem:[%s1121_s0] sm:$0xff]   ;;  %v790_v29 = vld [vmem:[%s1124_s3 + $0x50] ss:$8 sps:$4 sm:$0xff]   ;;  %v794_v32 = vld [vmem:[%s1124_s3 + $0x74] ss:$8 sps:$4 sm:$0xff]  }
   0xb   :  { %149 = vmatpush1.bf16.msra.mxu0 %v756_v6  ;;  %409 = vmatprep.subr.bf16.mxu1 %v779_v16  ;;  %v791_v30 = vld [vmem:[%s1124_s3 + $0x64] ss:$8 sps:$4 sm:$0xff]   ;;  %v793_v31 = vld [vmem:[%s1124_s3 + $0x60] ss:$8 sps:$4 sm:$0xff]   ;;  %v796_v33 = vld [vmem:[%s1124_s3 + $0x70] ss:$8 sps:$4 sm:$0xff]  }
   0xc   :  { %150 = vmatprep.subr.bf16.mxu0 %v757_v7  ;;  %v797_v34 = vld [vmem:[%s1124_s3 + $0x84] ss:$8 sps:$4 sm:$0xff]  }
   0xe   :  { %410 = vmatpush1.bf16.msra.mxu1 %v781_v18 }
   0xf   :  { %151 = vmatpush1.bf16.msra.mxu0 %v759_v8  ;;  %411 = vmatprep.subr.bf16.mxu1 %v782_v20 }
  0x10   :  { %152 = vmatprep.subr.bf16.mxu0 %v760_v9 }
  0x12   :  { %412 = vmatpush1.bf16.msra.mxu1 %v784_v22 }
  0x13   :  { %153 = vmatpush1.bf16.msra.mxu0 %v762_v13  ;;  %413 = vmatprep.subr.bf16.mxu1 %v785_v24 }
  0x14   :  { %154 = vmatprep.subr.bf16.mxu0 %v763_v15 }
  0x16   :  { %414 = vmatpush1.bf16.msra.mxu1 %v787_v26 }
  0x17   :  { %155 = vmatpush1.bf16.msra.mxu0 %v765_v17  ;;  %415 = vmatprep.subr.bf16.mxu1 %v788_v28 }
  0x18   :  { %156 = vmatprep.subr.bf16.mxu0 %v766_v19 }
  0x1a   :  { %416 = vmatpush1.bf16.msra.mxu1 %v790_v29 }
  0x1b   :  { %157 = vmatpush1.bf16.msra.mxu0 %v768_v21  ;;  %417 = vmatprep.subr.bf16.mxu1 %v791_v30 }
  0x1c   :  { %158 = vmatprep.subr.bf16.mxu0 %v769_v23 }
  0x1e   :  { %418 = vmatpush1.bf16.msra.mxu1 %v793_v31 }
  0x1f   :  { %159 = vmatpush1.bf16.msra.mxu0 %v771_v25  ;;  %419 = vmatprep.subr.bf16.mxu1 %v794_v32 }
  0x22   :  { %177 = vmatmul.mubr.bf16.vlgmr.msra.gmra.mrb[0].mxu0 %v772_v27 }
  0x23   :  { %12 = vsyncpa [#allocation3], 0  ;;  %420 = vmatpush1.bf16.msra.mxu1 %v796_v33  ;;  %v799_v35 = vld [vmem:[%s1124_s3 + $0x80] ss:$8 sps:$4 sm:$0xff]   ;;  %v800_v36 = vld [vmem:[%s1124_s3 + $0x94] ss:$8 sps:$4 sm:$0xff]   ;;  %v48_v60 = vlaneseq }
  0x24   :  { %421 = vmatprep.subr.bf16.mxu1 %v797_v34  ;;  %v802_v37 = vld [vmem:[%s1124_s3 + $0x90] ss:$8 sps:$4 sm:$0xff]   ;;  %v803_v38 = vld [vmem:[%s1124_s3 + $0xa4] ss:$8 sps:$4 sm:$0xff]   ;;  %v805_v39 = vld [vmem:[%s1124_s3 + $0xa0] ss:$8 sps:$4 sm:$0xff]  }
  0x25   :  { %v806_v40 = vld [vmem:[%s1124_s3 + $0xb4] ss:$8 sps:$4 sm:$0xff]   ;;  %v808_v41 = vld [vmem:[%s1124_s3 + $0xb0] ss:$8 sps:$4 sm:$0xff]   ;;  %v809_v42 = vld [vmem:[%s1124_s3 + $0xc4] ss:$8 sps:$4 sm:$0xff]  }
  0x26   :  { %v811_v43 = vld [vmem:[%s1124_s3 + $0xc0] ss:$8 sps:$4 sm:$0xff]   ;;  %v812_v44 = vld [vmem:[%s1124_s3 + $0xd4] ss:$8 sps:$4 sm:$0xff]   ;;  %v814_v45 = vld [vmem:[%s1124_s3 + $0xd0] ss:$8 sps:$4 sm:$0xff]  }
  0x27   :  { %422 = vmatpush1.bf16.msra.mxu1 %v799_v35  ;;  %v815_v46 = vld [vmem:[%s1124_s3 + $0xe4] ss:$8 sps:$4 sm:$0xff]   ;;  %v817_v47 = vld [vmem:[%s1124_s3 + $0xe0] ss:$8 sps:$4 sm:$0xff]   ;;  %v818_v48 = vld [vmem:[%s1124_s3 + $0xf4] ss:$8 sps:$4 sm:$0xff]  }
  0x28   :  { %423 = vmatprep.subr.bf16.mxu1 %v800_v36  ;;  %v820_v49 = vld [vmem:[%s1124_s3 + $0xf0] ss:$8 sps:$4 sm:$0xff]   ;;  %v821_v50 = vld [vmem:[%s1126_s5 + $0x40] sm:$0xff]   ;;  %v823_v52 = vld [vmem:[%s1126_s5 + $0x48] sm:$0xff]   ;;  %v49_v61 = vshrl.u32 %v48_v60, 7  ;;  %s862_s11 = smov [#allocation2]  }
  0x29   :  { %v822_v51 = vld [vmem:[%s1126_s5] sm:$0xff]   ;;  %722 = vmatprep.subr.bf16.mxu0 %v821_v50  ;;  %v824_v53 = vld [vmem:[%s1126_s5 + $0x8] sm:$0xff]   ;;  %v825_v54 = vld [vmem:[%s1126_s5 + $0x50] sm:$0xff]   ;;  %s645_s12 = sshll.u32 %s862_s11, 4  ;;  %s646_s12 = int_to_ptr.vmem [resolvable:$true] %s645_s12 }
  0x2a   :  { %723 = vmatpush3.bf16.msra.mxu0 %v822_v51  ;;  %v826_v55 = vld [vmem:[%s1126_s5 + $0x10] sm:$0xff]   ;;  %v827_v56 = vld [vmem:[%s1126_s5 + $0x58] sm:$0xff]   ;;  %v829_v58 = vld [vmem:[%s1126_s5 + $0x60] sm:$0xff]   ;;  %v50_v62 = vsub.s32 0, %v49_v61  ;;  %v54_v0 = vsub.s32 1, %v49_v61  ;;  %s837_s1 = scalar_lea.vmem %s646_s12, 256  ;;  %p842_p1 = scmp.lt.s32.totalorder %s646_s12, %s646_s12 }
  0x2b   :  { %424 = vmatpush1.bf16.msra.mxu1 %v802_v37  ;;  %724 = vmatprep.subr.bf16.mxu0 %v823_v52  ;;  %v828_v57 = vld [vmem:[%s1126_s5 + $0x18] sm:$0xff]   ;;  %v830_v59 = vld [vmem:[%s1126_s5 + $0x20] sm:$0xff]   ;;  %v831_v21 = vld [vmem:[%s1126_s5 + $0x68] sm:$0xff]   ;;  %p838_p0 = scmp.ne.s32.totalorder %s646_s12, %s837_s1  ;;  %p843_p2 = scmp.lt.s32.totalorder %s837_s1, %s837_s1 }
  0x2c   :  { %425 = vmatprep.subr.bf16.mxu1 %v803_v38  ;;  %v46_v63 = vld [vmem:[%s1123_s2] sm:$0x3]  ;;  %v832_v22 = vld [vmem:[%s1126_s5 + $0x28] sm:$0xff]   ;;  %v833_v23 = vld [vmem:[%s1126_s5 + $0x70] sm:$0xff]  }
  0x2d   :  { %v51_v1 = vrot.slane %v46_v63, %v50_v62  ;;  %v55_v2 = vrot.slane %v46_v63, %v54_v0  ;;  %v834_v24 = vld [vmem:[%s1126_s5 + $0x30] sm:$0xff]   ;;  %v835_v25 = vld [vmem:[%s1126_s5 + $0x78] sm:$0xff]   ;;  %v233_v27 = vld [vmem:[%s1125_s4] sm:$0x3]  ;;  %p844_p3 = por %p843_p2, %p842_p1 }
  0x2e   :  { %725 = vmatpush3.bf16.msra.mxu0 %v824_v53  ;;  %v836_v26 = vld [vmem:[%s1126_s5 + $0x38] sm:$0xff]   ;;  %v238_v28 = vrot.slane %v233_v27, %v50_v62  ;;  %v242_v29 = vrot.slane %v233_v27, %v54_v0 }
  0x2f   :  { %426 = vmatpush1.bf16.msra.mxu1 %v805_v39  ;;  %726 = vmatprep.subr.bf16.mxu0 %v825_v54  ;;  %p845_p4 = pnand %p844_p3, %p838_p0 }
  0x30   :  { %427 = vmatprep.subr.bf16.mxu1 %v806_v40 }
  0x32   :  { %727 = vmatpush3.bf16.msra.mxu0 %v826_v55 }
  0x33   :  { %428 = vmatpush1.bf16.msra.mxu1 %v808_v41  ;;  %728 = vmatprep.subr.bf16.mxu0 %v827_v56 }
  0x34   :  { %429 = vmatprep.subr.bf16.mxu1 %v809_v42 }
  0x36   :  { %729 = vmatpush3.bf16.msra.mxu0 %v828_v57 }
  0x37   :  { %430 = vmatpush1.bf16.msra.mxu1 %v811_v43  ;;  %730 = vmatprep.subr.bf16.mxu0 %v829_v58 }
  0x38   :  { %431 = vmatprep.subr.bf16.mxu1 %v812_v44 }
  0x3a   :  { %731 = vmatpush3.bf16.msra.mxu0 %v830_v59 }
  0x3b   :  { %432 = vmatpush1.bf16.msra.mxu1 %v814_v45  ;;  %732 = vmatprep.subr.bf16.mxu0 %v831_v21 }
  0x3c   :  { %433 = vmatprep.subr.bf16.mxu1 %v815_v46 }
  0x3e   :  { %733 = vmatpush3.bf16.msra.mxu0 %v832_v22 }
  0x3f   :  { %434 = vmatpush1.bf16.msra.mxu1 %v817_v47  ;;  %734 = vmatprep.subr.bf16.mxu0 %v833_v23 }
  0x40   :  { %435 = vmatprep.subr.bf16.mxu1 %v818_v48 }
  0x42   :  { %735 = vmatpush3.bf16.msra.mxu0 %v834_v24 }
  0x43   :  { %436 = vmatpush1.bf16.msra.mxu1 %v820_v49  ;;  %736 = vmatprep.subr.bf16.mxu0 %v835_v25  ;;  %v705_v49 = vld [vmem:[%s1127_s6] ss:$0 sm:$0xff] }
  0x46   :  { %737 = vmatpush3.bf16.msra.mxu0 %v836_v26 }
  0xf5   :  { %v178_v3 = vpop.f32.mrb[0].mxu0 }
  0xf6   :  { %v179_v4 = vadd.f32 %v178_v3, %v51_v1  ;;  %v180_v5 = vpop.f32.mrb[1].mxu0 }
  0xf7   :  { %v181_v6 = vadd.f32 %v180_v5, %v55_v2  ;;  %v182_v7 = vpop.f32.mrb[2].mxu0 }
  0xf8   :  { %v191_v8 = vmul.f32 0.01, %v179_v4  ;;  %v183_v9 = vadd.f32 %v182_v7, %v51_v1  ;;  %v184_v10 = vpop.f32.mrb[3].mxu0  ;;  %vm187_vm0 = vcmp.gt.f32.partialorder %v179_v4, 0.0 }
  0xf9   :  { %v192_v11 = vmul.f32 0.01, %v181_v6  ;;  %v185_v12 = vadd.f32 %v184_v10, %v55_v2  ;;  %vm188_vm2 = vcmp.gt.f32.partialorder %v181_v6, 0.0 }
  0xfa   :  { %vm189_vm1 = vcmp.gt.f32.partialorder %v183_v9, 0.0  ;;  %v193_v13 = vmul.f32 0.01, %v183_v9  ;;  %v195_v15 = vsel %vm187_vm0, %v179_v4, %v191_v8 }
  0xfb   :  { %v194_v14 = vmul.f32 0.01, %v185_v12  ;;  %vm190_vm3 = vcmp.gt.f32.partialorder %v185_v12, 0.0  ;;  %v196_v17 = vsel %vm188_vm2, %v181_v6, %v192_v11 }
  0xfc   :  { %v197_v16 = vsel %vm189_vm1, %v183_v9, %v193_v13 }
  0xfd   :  { %v198_v18 = vsel %vm190_vm3, %v185_v12, %v194_v14  ;;  %v199_v19 = vpack.c.bf16 %v197_v16, %v195_v15 }
  0xfe   :  { %v200_v20 = vpack.c.bf16 %v198_v18, %v196_v17 }
 0x100   :  { %437 = vmatprep.mubr.bf16.mxu1 %v200_v20 }
 0x101   :  { %438 = vmatmul.mubr.bf16.vlgmr.msra.gmra.mrb[0].mxu1 %v199_v19 }
 0x1d4   :  { %v439_v30 = vpop.f32.mrb[0].mxu1 }
 0x1d5   :  { %v440_v31 = vadd.f32 %v439_v30, %v238_v28  ;;  %v441_v32 = vpop.f32.mrb[1].mxu1 }
 0x1d6   :  { %v442_v33 = vadd.f32 %v441_v32, %v242_v29  ;;  %v443_v34 = vpop.f32.mrb[2].mxu1 }
 0x1d7   :  { %v452_v35 = vmul.f32 0.01, %v440_v31  ;;  %v444_v36 = vadd.f32 %v443_v34, %v238_v28  ;;  %v445_v37 = vpop.f32.mrb[3].mxu1  ;;  %vm448_vm4 = vcmp.gt.f32.partialorder %v440_v31, 0.0 }
 0x1d8   :  { %v453_v38 = vmul.f32 0.01, %v442_v33  ;;  %v446_v39 = vadd.f32 %v445_v37, %v242_v29  ;;  %vm449_vm5 = vcmp.gt.f32.partialorder %v442_v33, 0.0 }
 0x1d9   :  { %vm450_vm6 = vcmp.gt.f32.partialorder %v444_v36, 0.0  ;;  %v454_v40 = vmul.f32 0.01, %v444_v36  ;;  %v456_v42 = vsel %vm448_vm4, %v440_v31, %v452_v35 }
 0x1da   :  { %vm451_vm7 = vcmp.gt.f32.partialorder %v446_v39, 0.0  ;;  %v455_v41 = vmul.f32 0.01, %v446_v39  ;;  %v457_v45 = vsel %vm449_vm5, %v442_v33, %v453_v38 }
 0x1db   :  { %v458_v43 = vsel %vm450_vm6, %v444_v36, %v454_v40 }
 0x1dc   :  { %v460_v44 = vpack.c.bf16 %v458_v43, %v456_v42  ;;  %v459_v46 = vsel %vm451_vm7, %v446_v39, %v455_v41 }
 0x1dd   :  { %v461_v47 = vpack.c.bf16 %v459_v46, %v457_v45 }
 0x1df   :  { %629 = vmatprep.mubr.bf16.mxu0 %v461_v47 }
 0x1e0   :  { %630 = vmatmul.mubr.bf16.vlgmr.msra.gmra.mrb[4].mxu0 %v460_v44 }
 0x2b3   :  { %v738_v48 = vpop.f32.mrb[4].mxu0 }
 0x2b4   :  { %v739_v50 = vpop.f32.mrb[5].mxu0 }
 0x2b5   :  { %v740_v51 = vadd.f32 %v739_v50, %v738_v48  ;;  %v741_v52 = vpop.f32.mrb[6].mxu0 }
 0x2b6   :  { %v742_v53 = vpop.f32.mrb[7].mxu0 }
 0x2b7   :  { %v632_v54 = vadd.f32 %v740_v51, %v705_v49  ;;  %v743_v55 = vadd.f32 %v742_v53, %v741_v52 }
 0x2b9   :  { %638 = vst [vmem:[#allocation2] sm:$0xff] %v632_v54  ;;  %v635_v56 = vadd.f32 %v743_v55, %v705_v49 }
 0x2bb   :  { %639 = vst [vmem:[#allocation2 + $0x8] sm:$0xff] %v635_v56 }
 0x2bc   :  { %848 = shalt.err (!%p845_p4)
}
 0x2bd   :  { %s849_s14 = scalar_lea.hbm %s1128_s7, 256 }
 0x2be   :  { %p850_p5 = scmp.ne.s32.totalorder %s1128_s7, %s849_s14  ;;  %p853_p6 = scmp.lt.u32.totalorder %s849_s14, %s1128_s7 }
 0x2c0   :  { %p855_p7 = pnand %p853_p6, %p850_p5 }
 0x2c2   :  { %858 = shalt.err (!%p855_p7)
}
 0x2c3   :  { %s863_s18 = smov 128   ;;  %s864_s19 = smov 8  }
 0x2c4   :  { %651 = dma.vmem_to_hbm [thread:$0]  %s646_s12, 256, %s1128_s7, [#allocation3], %s863_s18, %s863_s18, %s864_s19  }
 0x2c5   :  { %859 = dma.done.wait [#allocation3], 256  }
 0x2c6   :  { %860 = vsyncadd [#allocation3], 4294967040 }
 0x2c7   :  { %655 = vsyncpa [#allocation3], 1 }

</bundles_post_ra>
